<compile_context>
chip_gen: v5e
topology: v5e:2x2
jax: 0.10.0
libtpu: 0.0.40
codegen_flags: <defaults>
</compile_context>

<pallas_src>
import jax
import jax.numpy as jnp
from jax.experimental import pallas as pl
from jax.experimental.pallas import tpu as pltpu


def _round_up(x, m):
    return ((x + m - 1) // m) * m


def _dann_linear_kernel(x_ref, w1_ref, b1_ref, w2_ref, b2_ref, w3_ref, b3_ref,
                        o_ref):
    # fc1  (the 'fc1_relu' slot was overwritten by Dropout -> identity at
    # inference, so intentionally no ReLU here)
    h1 = jnp.dot(x_ref[...], w1_ref[...],
                 preferred_element_type=jnp.float32) + b1_ref[...]
    # TODO(synk): training-mode Dropout (stochastic mask via pltpu.prng_*) not implemented.

    # fc2 + ReLU  (cast activation back to MXU compute dtype, accumulate f32)
    h2 = jnp.dot(h1.astype(w2_ref.dtype), w2_ref[...],
                 preferred_element_type=jnp.float32) + b2_ref[...]
    h2 = jnp.maximum(h2, 0.0)

    # fc3
    out = jnp.dot(h2.astype(w3_ref.dtype), w3_ref[...],
                  preferred_element_type=jnp.float32) + b3_ref[...]
    o_ref[...] = out.astype(o_ref.dtype)


def dann_linear_forward(x, params, *, compute_dtype=jnp.bfloat16,
                        max_block_b=512):
    """x: (B, in_dim) float32. params: dict w1,b1,w2,b2,w3,b3 (float32).

    Weights are stored pre-transposed as (in_features, out_features) so the
    kernel computes plain x @ W + b.
    """
    w1, b1 = params["w1"], params["b1"]
    w2, b2 = params["w2"], params["b2"]
    w3, b3 = params["w3"], params["b3"]

    B, in_dim = x.shape
    hid = w1.shape[1]
    out_dim = w3.shape[1]
    out_pad = _round_up(out_dim, 128)          # lane-dense (unmasked) stores
    cd = jnp.dtype(compute_dtype)
    cd_bytes = cd.itemsize

    # --- cast MXU operands to the compute dtype; biases stay f32 -------------
    xc = x.astype(cd)
    w1c = w1.astype(cd)
    w2c = w2.astype(cd)
    w3c = jnp.pad(w3.astype(cd), ((0, 0), (0, out_pad - out_dim)))
    b1f = b1.astype(jnp.float32)
    b2f = b2.astype(jnp.float32)
    b3p = jnp.pad(b3.astype(jnp.float32), ((0, 0), (0, out_pad - out_dim)))

    # --- choose batch tile from an explicit VMEM budget -----------------------
    # Everything is (up to) double-buffered by the pipeline -> factor 2.
    weight_bytes = ((in_dim * hid + hid * hid + hid * out_pad) * cd_bytes +
                    (hid + hid + out_pad) * 4)

    def act_tile_bytes(tb):
        return tb * in_dim * cd_bytes + tb * out_pad * 4

    budget = 24 * 1024 * 1024   # conservative: works inside v7x scoped VMEM
    tb = 8
    cand = max_block_b
    while cand >= 8:
        if 2 * (weight_bytes + act_tile_bytes(cand)) <= budget:
            tb = cand
            break
        cand //= 2
    # TODO(synk): if weights alone exceed the budget (very large hidden dims),
    # a K/N-tiled multi-axis grid would be needed; not handled here.
    tb = max(8, min(tb, _round_up(B, 8)))      # multiple of 8 (f32 sublane)
    b_pad = _round_up(B, tb)
    if b_pad != B:
        xc = jnp.pad(xc, ((0, b_pad - B), (0, 0)))

    grid = (b_pad // tb,)

    vmem_needed = 2 * (weight_bytes + act_tile_bytes(tb))
    vmem_limit = int(min(max(2 * vmem_needed, 4 * 1024 * 1024),
                         64 * 1024 * 1024))

    cost = pl.CostEstimate(
        flops=2 * b_pad * (in_dim * hid + hid * hid + hid * out_pad),
        transcendentals=0,
        bytes_accessed=(b_pad * in_dim * cd_bytes +              # x
                        weight_bytes +                           # params
                        b_pad * out_pad * 4),                    # out
    )

    out = pl.pallas_call(
        _dann_linear_kernel,
        out_shape=jax.ShapeDtypeStruct((b_pad, out_pad), jnp.float32),
        grid=grid,
        in_specs=[
            pl.BlockSpec((tb, in_dim), lambda i: (i, 0)),        # x: batch-tiled
            pl.BlockSpec((in_dim, hid), lambda i: (0, 0)),       # w1: resident
            pl.BlockSpec((1, hid), lambda i: (0, 0)),            # b1
            pl.BlockSpec((hid, hid), lambda i: (0, 0)),          # w2
            pl.BlockSpec((1, hid), lambda i: (0, 0)),            # b2
            pl.BlockSpec((hid, out_pad), lambda i: (0, 0)),      # w3 (padded N)
            pl.BlockSpec((1, out_pad), lambda i: (0, 0)),        # b3 (padded N)
        ],
        out_specs=pl.BlockSpec((tb, out_pad), lambda i: (i, 0)),
        compiler_params=pltpu.CompilerParams(
            dimension_semantics=("parallel",),
            vmem_limit_bytes=vmem_limit,
        ),
        cost_estimate=cost,
    )(xc, w1c, b1f, w2c, b2f, w3c, b3p)

    return out[:B, :out_dim]


def init_params(key, in_dim, hidden_dim, out_dim):
    """Deterministic init mimicking nn.Linear (uniform +-1/sqrt(fan_in)).
    Weights stored as (in_features, out_features); biases as (1, out_features)."""
    ks = jax.random.split(key, 6)

    def linear(kw, kb, fan_in, fan_out):
        bound = 1.0 / jnp.sqrt(jnp.float32(fan_in))
        w = jax.random.uniform(kw, (fan_in, fan_out), jnp.float32,
                               minval=-bound, maxval=bound)
        b = jax.random.uniform(kb, (1, fan_out), jnp.float32,
                               minval=-bound, maxval=bound)
        return w, b

    w1, b1 = linear(ks[0], ks[1], in_dim, hidden_dim)
    w2, b2 = linear(ks[2], ks[3], hidden_dim, hidden_dim)
    w3, b3 = linear(ks[4], ks[5], hidden_dim, out_dim)
    return dict(w1=w1, b1=b1, w2=w2, b2=b2, w3=w3, b3=b3)


def reference_forward(x, p, compute_dtype=jnp.bfloat16):
    """Pure-JAX reference using the same cast pattern as the kernel."""
    cd = compute_dtype
    h1 = jnp.dot(x.astype(cd), p["w1"].astype(cd),
                 preferred_element_type=jnp.float32) + p["b1"]
    h2 = jnp.dot(h1.astype(cd), p["w2"].astype(cd),
                 preferred_element_type=jnp.float32) + p["b2"]
    h2 = jnp.maximum(h2, 0.0)
    return jnp.dot(h2.astype(cd), p["w3"].astype(cd),
                   preferred_element_type=jnp.float32) + p["b3"]


def reference_forward_f32(x, p):
    """Full-precision reference (matches the PyTorch module numerics)."""
    h1 = x @ p["w1"] + p["b1"]
    h2 = jnp.maximum(h1 @ p["w2"] + p["b2"], 0.0)
    return h2 @ p["w3"] + p["b3"]


if __name__ == "__main__":
    key = jax.random.PRNGKey(0)
    k_x, k_p = jax.random.split(key)

    B, in_dim, hidden_dim, out_dim = 8, 32, 64, 16
    x = jax.random.normal(k_x, (B, in_dim), jnp.float32)
    params = init_params(k_p, in_dim, hidden_dim, out_dim)

    out = dann_linear_forward(x, params)
    out = jax.block_until_ready(out)

    assert out.shape == (B, out_dim)
    # Tight check against the matching-cast (bf16 MXU, f32 accum) reference.
    ref = reference_forward(x, params)
    assert jnp.allclose(out, ref, atol=1e-3, rtol=1e-3)
    # Loose sanity check against the full-f32 PyTorch-equivalent forward.
    ref32 = reference_forward_f32(x, params)
    assert jnp.allclose(out, ref32, atol=5e-2, rtol=5e-2)

    print("KERNEL_OK")
</pallas_src>

<mosaic_0001>
module attributes {stable_mosaic.version = 11 : i64} {
  func.func @_dann_linear_kernel(%arg0: i32, %arg1: memref<8x32xbf16, #tpu.memory_space<vmem>>, %arg2: memref<32x64xbf16, #tpu.memory_space<vmem>>, %arg3: memref<1x64xf32, #tpu.memory_space<vmem>>, %arg4: memref<64x64xbf16, #tpu.memory_space<vmem>>, %arg5: memref<1x64xf32, #tpu.memory_space<vmem>>, %arg6: memref<64x128xbf16, #tpu.memory_space<vmem>>, %arg7: memref<1x128xf32, #tpu.memory_space<vmem>>, %arg8: memref<8x128xf32, #tpu.memory_space<vmem>>) attributes {dimension_semantics = [#tpu.dimension_semantics<parallel>], iteration_bounds = array<i64: 1>, scalar_prefetch = 0 : i64, scratch_operands = 0 : i64, tpu.core_type = #tpu.core_type<tc>, window_params = [{transform_indices = @transform_0, window_bounds = array<i64: 8, 32>}, {pipeline_mode = #tpu.pipeline_mode<synchronous>, transform_indices = @transform_1, window_bounds = array<i64: 32, 64>}, {pipeline_mode = #tpu.pipeline_mode<synchronous>, transform_indices = @transform_2, window_bounds = array<i64: 1, 64>}, {pipeline_mode = #tpu.pipeline_mode<synchronous>, transform_indices = @transform_3, window_bounds = array<i64: 64, 64>}, {pipeline_mode = #tpu.pipeline_mode<synchronous>, transform_indices = @transform_4, window_bounds = array<i64: 1, 64>}, {pipeline_mode = #tpu.pipeline_mode<synchronous>, transform_indices = @transform_5, window_bounds = array<i64: 64, 128>}, {pipeline_mode = #tpu.pipeline_mode<synchronous>, transform_indices = @transform_6, window_bounds = array<i64: 1, 128>}, {transform_indices = @transform_7, window_bounds = array<i64: 8, 128>}]} {
    %c0 = arith.constant 0 : index
    %c0_0 = arith.constant 0 : index
    %0 = vector.load %arg1[%c0, %c0_0] : memref<8x32xbf16, #tpu.memory_space<vmem>>, vector<8x32xbf16>
    %c0_1 = arith.constant 0 : index
    %c0_2 = arith.constant 0 : index
    %1 = vector.load %arg2[%c0_1, %c0_2] : memref<32x64xbf16, #tpu.memory_space<vmem>>, vector<32x64xbf16>
    %cst = arith.constant dense<0.000000e+00> : vector<8x64xf32>
    %2 = tpu.matmul %0, %1, %cst {dimension_numbers = #tpu.dot_dimension_numbers<[1], [0], [0], [1], [0, 0, 1, 1], [], []>} : vector<8x32xbf16>, vector<32x64xbf16>, vector<8x64xf32> -> vector<8x64xf32>
    %c0_3 = arith.constant 0 : index
    %c0_4 = arith.constant 0 : index
    %3 = vector.load %arg3[%c0_3, %c0_4] : memref<1x64xf32, #tpu.memory_space<vmem>>, vector<1x64xf32>
    %4 = vector.broadcast %3 : vector<1x64xf32> to vector<8x64xf32>
    %5 = arith.addf %2, %4 : vector<8x64xf32>
    %6 = arith.truncf %5 : vector<8x64xf32> to vector<8x64xbf16>
    %c0_5 = arith.constant 0 : index
    %c0_6 = arith.constant 0 : index
    %7 = vector.load %arg4[%c0_5, %c0_6] : memref<64x64xbf16, #tpu.memory_space<vmem>>, vector<64x64xbf16>
    %cst_7 = arith.constant dense<0.000000e+00> : vector<8x64xf32>
    %8 = tpu.matmul %6, %7, %cst_7 {dimension_numbers = #tpu.dot_dimension_numbers<[1], [0], [0], [1], [0, 0, 1, 1], [], []>} : vector<8x64xbf16>, vector<64x64xbf16>, vector<8x64xf32> -> vector<8x64xf32>
    %c0_8 = arith.constant 0 : index
    %c0_9 = arith.constant 0 : index
    %9 = vector.load %arg5[%c0_8, %c0_9] : memref<1x64xf32, #tpu.memory_space<vmem>>, vector<1x64xf32>
    %10 = vector.broadcast %9 : vector<1x64xf32> to vector<8x64xf32>
    %11 = arith.addf %8, %10 : vector<8x64xf32>
    %cst_10 = arith.constant 0.000000e+00 : f32
    %12 = vector.broadcast %cst_10 : f32 to vector<8x64xf32>
    %13 = arith.maximumf %11, %12 : vector<8x64xf32>
    %14 = arith.truncf %13 : vector<8x64xf32> to vector<8x64xbf16>
    %c0_11 = arith.constant 0 : index
    %c0_12 = arith.constant 0 : index
    %15 = vector.load %arg6[%c0_11, %c0_12] : memref<64x128xbf16, #tpu.memory_space<vmem>>, vector<64x128xbf16>
    %cst_13 = arith.constant dense<0.000000e+00> : vector<8x128xf32>
    %16 = tpu.matmul %14, %15, %cst_13 {dimension_numbers = #tpu.dot_dimension_numbers<[1], [0], [0], [1], [0, 0, 1, 1], [], []>} : vector<8x64xbf16>, vector<64x128xbf16>, vector<8x128xf32> -> vector<8x128xf32>
    %c0_14 = arith.constant 0 : index
    %c0_15 = arith.constant 0 : index
    %17 = vector.load %arg7[%c0_14, %c0_15] : memref<1x128xf32, #tpu.memory_space<vmem>>, vector<1x128xf32>
    %18 = vector.broadcast %17 : vector<1x128xf32> to vector<8x128xf32>
    %19 = arith.addf %16, %18 : vector<8x128xf32>
    %c0_16 = arith.constant 0 : index
    %c0_17 = arith.constant 0 : index
    %20 = vector.load %arg8[%c0_16, %c0_17] : memref<8x128xf32, #tpu.memory_space<vmem>>, vector<8x128xf32>
    tpu.vector_store %arg8[%c0_16, %c0_17], %19 {strides = array<i32>} : memref<8x128xf32, #tpu.memory_space<vmem>>, vector<8x128xf32>,
    return
  }
  func.func @transform_0(%arg0: i32) -> (i32, i32) {
    %c0_i32 = arith.constant 0 : i32
    %c0_i32_0 = arith.constant 0 : i32
    return %arg0, %c0_i32 : i32, i32
  }
  func.func @transform_1(%arg0: i32) -> (i32, i32) {
    %c0_i32 = arith.constant 0 : i32
    %c0_i32_0 = arith.constant 0 : i32
    %c0_i32_1 = arith.constant 0 : i32
    return %c0_i32, %c0_i32_0 : i32, i32
  }
  func.func @transform_2(%arg0: i32) -> (i32, i32) {
    %c0_i32 = arith.constant 0 : i32
    %c0_i32_0 = arith.constant 0 : i32
    %c0_i32_1 = arith.constant 0 : i32
    return %c0_i32, %c0_i32_0 : i32, i32
  }
  func.func @transform_3(%arg0: i32) -> (i32, i32) {
    %c0_i32 = arith.constant 0 : i32
    %c0_i32_0 = arith.constant 0 : i32
    %c0_i32_1 = arith.constant 0 : i32
    return %c0_i32, %c0_i32_0 : i32, i32
  }
  func.func @transform_4(%arg0: i32) -> (i32, i32) {
    %c0_i32 = arith.constant 0 : i32
    %c0_i32_0 = arith.constant 0 : i32
    %c0_i32_1 = arith.constant 0 : i32
    return %c0_i32, %c0_i32_0 : i32, i32
  }
  func.func @transform_5(%arg0: i32) -> (i32, i32) {
    %c0_i32 = arith.constant 0 : i32
    %c0_i32_0 = arith.constant 0 : i32
    %c0_i32_1 = arith.constant 0 : i32
    return %c0_i32, %c0_i32_0 : i32, i32
  }
  func.func @transform_6(%arg0: i32) -> (i32, i32) {
    %c0_i32 = arith.constant 0 : i32
    %c0_i32_0 = arith.constant 0 : i32
    %c0_i32_1 = arith.constant 0 : i32
    return %c0_i32, %c0_i32_0 : i32, i32
  }
  func.func @transform_7(%arg0: i32) -> (i32, i32) {
    %c0_i32 = arith.constant 0 : i32
    %c0_i32_0 = arith.constant 0 : i32
    return %arg0, %c0_i32 : i32, i32
  }
}

</mosaic_0001>

<bundles_post_ra>
// kernel: tpu_custom_call.1
= control target key start
LH: loop header
LB: loop body
LE: loop exit
PB: predicated region body
PF: predicated region fallthrough
CT: control target
= control target key end

     0   :  { %12 = vsyncpa [#allocation3], 0  ;;  %s517_s0 = inlined_call_operand.hbm [shape: bf16[8,32], index: 0, kind: input, shape index: {}]   ;;  %s518_s1 = inlined_call_operand.hbm [shape: bf16[32,64], index: 1, kind: input, shape index: {}]   ;;  %s519_s2 = inlined_call_operand.vmem [shape: f32[1,64], index: 2, kind: input, shape index: {}]   ;;  %s520_s3 = inlined_call_operand.hbm [shape: bf16[64,64], index: 3, kind: input, shape index: {}]   ;;  %s521_s4 = inlined_call_operand.vmem [shape: f32[1,64], index: 4, kind: input, shape index: {}]   ;;  %s522_s5 = inlined_call_operand.hbm [shape: bf16[64,128], index: 5, kind: input, shape index: {}]   ;;  %s523_s6 = inlined_call_operand.vmem [shape: f32[1,128], index: 6, kind: input, shape index: {}]   ;;  %s524_s7 = inlined_call_operand.hbm [shape: f32[8,128], index: 7, kind: output, shape index: {}]  }
   0x1   :  { %13 = vsyncpa [#allocation6], 0 }
   0x2   :  { %14 = vsyncpa [#allocation9], 0  ;;  %s31_s26 = sshll.u32 %s518_s1, 4  ;;  %s32_s26 = int_to_ptr.hbm [resolvable:$true] %s31_s26 }
   0x3   :  { %15 = vsyncpa [#allocation4], 0  ;;  %s446_s27 = smov [#allocation5]   ;;  %s21_s8 = sshll.u32 %s517_s0, 4  ;;  %s22_s8 = int_to_ptr.hbm [resolvable:$true] %s21_s8 }
   0x4   :  { %s33_s28 = sshll.u32 %s446_s27, 4  ;;  %s447_s9 = smov 64   ;;  %s34_s28 = int_to_ptr.vmem [resolvable:$true] %s33_s28 }
   0x5   :  { %s448_s10 = smov 4   ;;  %s449_s11 = smov [#allocation2]  }
   0x6   :  { %39 = dma.hbm_to_vmem [thread:$0]  %s32_s26, 256, %s34_s28, [#allocation6], %s447_s9, %s447_s9, %s448_s10  }
   0x7   :  { %s23_s12 = sshll.u32 %s449_s11, 4  ;;  %s46_s15 = sshll.u32 %s520_s3, 4  ;;  %s24_s12 = int_to_ptr.vmem [resolvable:$true] %s23_s12  ;;  %s47_s15 = int_to_ptr.hbm [resolvable:$true] %s46_s15 }
   0x8   :  { %26 = dma.hbm_to_vmem [thread:$0]  %s22_s8, 64, %s24_s12, [#allocation3]  }
   0x9   :  { %s61_s17 = sshll.u32 %s522_s5, 4  ;;  %s450_s18 = smov [#allocation7]   ;;  %s62_s17 = int_to_ptr.hbm [resolvable:$true] %s61_s17 }
   0xa   :  { %s48_s19 = sshll.u32 %s450_s18, 4  ;;  %s451_s0 = smov [#allocation8]   ;;  %s49_s19 = int_to_ptr.vmem [resolvable:$true] %s48_s19 }
   0xb   :  { %54 = dma.hbm_to_vmem [thread:$0]  %s47_s15, 512, %s49_s19, [#allocation6], %s447_s9, %s447_s9, %s448_s10  }
   0xc   :  { %s63_s20 = sshll.u32 %s451_s0, 4  ;;  %s64_s20 = int_to_ptr.vmem [resolvable:$true] %s63_s20 }
   0xd   :  { %69 = dma.hbm_to_vmem [thread:$0]  %s62_s17, 512, %s64_s20, [#allocation9], %s447_s9, %s447_s9, %s448_s10  }
   0xe   :  { %438 = dma.done.wait [#allocation3], 64  }
   0xf   :  { %439 = vsyncadd [#allocation3], 4294967232 }
  0x10   :  { %440 = dma.done.wait [#allocation6], 768  }
  0x11   :  { %441 = vsyncadd [#allocation6], 4294966528 }
  0x12   :  { %442 = dma.done.wait [#allocation9], 512  }
  0x13   :  { %443 = vsyncadd [#allocation9], 4294966784  ;;  %v299_v0 = vld [vmem:[#allocation5 + $0x8] sm:$0xff]  ;;  %v298_v2 = vld [vmem:[#allocation5] sm:$0xff]  ;;  %vm110_vm0 = vcmask 261120   ;;  %vm164_vm1 = vcmask 523264  }
  0x14   :  { %v303_v1 = vld [vmem:[#allocation7 + $0x18] sm:$0xff]  ;;  %120 = vmatpush.bf16.msra.mxu0 %v299_v0  ;;  %v302_v3 = vld [vmem:[#allocation7 + $0x10] sm:$0xff]  ;;  %v89_v4 = vld [vmem:[#allocation2] sm:$0xf]  ;;  %s452_s24 = smov [#allocation10]   ;;  %s243_s28 = sshll.u32 %s524_s7, 4  ;;  %s244_s28 = int_to_ptr.hbm [resolvable:$true] %s243_s28 }
  0x15   :  { %172 = vmatpush.bf16.msra.mxu1 %v303_v1  ;;  %v301_v5 = vld [vmem:[#allocation7 + $0x8] sm:$0xff]  ;;  %v300_v6 = vld [vmem:[#allocation7] sm:$0xff]  ;;  %v307_v7 = vld [vmem:[#allocation8 + $0x18] sm:$0xff]  ;;  %s241_s25 = sshll.u32 %s452_s24, 4  ;;  %s242_s25 = int_to_ptr.vmem [resolvable:$true] %s241_s25 }
  0x16   :  { %226 = vmatpush.bf16.msra.mxu2 %v307_v7  ;;  %v306_v8 = vld [vmem:[#allocation8 + $0x10] sm:$0xff]  ;;  %v315_v9 = vld [vmem:[%s519_s2] ss:$0 sm:$0xff]  ;;  %v304_v15 = vld [vmem:[#allocation8] sm:$0xff] }
  0x17   :  { %v305_v14 = vld [vmem:[#allocation8 + $0x8] sm:$0xff] }
  0x18   :  { %121 = vmatpush.bf16.msra.mxu0 %v298_v2  ;;  %v316_v16 = vld [vmem:[%s521_s4] ss:$0 sm:$0xff] }
  0x19   :  { %173 = vmatpush.bf16.msra.mxu1 %v302_v3  ;;  %v317_v22 = vld [vmem:[%s523_s6] ss:$0 sm:$0xff] }
  0x1a   :  { %227 = vmatpush.bf16.msra.mxu2 %v306_v8 }
  0x1b   :  { %263 = vmatmul.msk.bf16.vlgmr.msra.gmra.mxu0 %vm110_vm0, %v89_v4 }
  0x1d   :  { %174 = vmatpush.bf16.msra.mxu1 %v301_v5 }
  0x1e   :  { %228 = vmatpush.bf16.msra.mxu2 %v305_v14 }
  0x21   :  { %175 = vmatpush.bf16.msra.mxu1 %v300_v6 }
  0x22   :  { %229 = vmatpush.bf16.msra.mxu2 %v304_v15 }
  0x98   :  { %v123_v10 = vpop.f32.mrf.mxu0 }
  0x99   :  { %v124_v11 = vadd.f32 %v315_v9, %v123_v10 }
  0x9b   :  { %v127_v12 = vpack.c.bf16 %v124_v11, %v124_v11 }
  0x9d   :  { %280 = vmatmul.msk.bf16.vlgmr.msra.gmra.mxu1 %vm164_vm1, %v127_v12 }
  0xa0   :  { %v125_v13 = vpop.f32.mrf.mxu0 }
 0x11a   :  { %v177_v17 = vpop.f32.mrf.mxu1 }
 0x11b   :  { %v178_v18 = vadd.f32 %v316_v16, %v177_v17 }
 0x11d   :  { %v181_v19 = vmax.f32 %v178_v18, 0.0 }
 0x11f   :  { %v182_v20 = vpack.c.bf16 %v181_v19, %v181_v19 }
 0x121   :  { %297 = vmatmul.msk.bf16.vlgmr.msra.gmra.mxu2 %vm164_vm1, %v182_v20 }
 0x122   :  { %v179_v21 = vpop.f32.mrf.mxu1 }
 0x1a4   :  { %v231_v23 = vpop.f32.mrf.mxu2 }
 0x1a5   :  { %v232_v24 = vadd.f32 %v317_v22, %v231_v23 }
 0x1a7   :  { %235 = vst [vmem:[#allocation10] sm:$0xff] %v232_v24 }
 0x1a8   :  { %246 = dma.vmem_to_hbm [thread:$0]  %s242_s25, 128, %s244_s28, [#allocation4]  }
 0x1ac   :  { %v233_v25 = vpop.f32.mrf.mxu2 }
 0x1ad   :  { %444 = dma.done.wait [#allocation4], 128  }
 0x1ae   :  { %445 = vsyncadd [#allocation4], 4294967168 }
 0x1af   :  { %251 = vsyncpa [#allocation3], 1 }
 0x1b0   :  { %252 = vsyncpa [#allocation6], 1 }
 0x1b1   :  { %253 = vsyncpa [#allocation9], 1 }
 0x1b2   :  { %254 = vsyncpa [#allocation4], 1 }

</bundles_post_ra>
